<compile_context>
chip_gen: v5e
topology: v5e:2x2
jax: 0.10.0
libtpu: 0.0.40
codegen_flags: <defaults>
</compile_context>

<pallas_src>
import jax
import jax.numpy as jnp
from jax.experimental import pallas as pl
from jax.experimental.pallas import tpu as pltpu


def _se_kernel(x_ref, w1_ref, b1_ref, w2_ref, b2_ref, o_ref):
    # x_ref / o_ref: (Bt, C, HW)
    # w1_ref: (C, Cr)   b1_ref: (1, Cr)   w2_ref: (Cr, C)   b2_ref: (1, C)
    x = x_ref[...]                                        # native dtype tile
    hw = x.shape[2]

    # ----- squeeze: global average pool, accumulated in f32 -----
    mean = jnp.sum(x, axis=2, dtype=jnp.float32) * (1.0 / hw)          # (Bt, C)

    # ----- excitation: Linear -> ReLU -> Linear -> relu6(.+3)/6 (tiny, f32) --
    h = jnp.dot(mean, w1_ref[...], preferred_element_type=jnp.float32) + b1_ref[...]
    h = jnp.maximum(h, 0.0)                                            # (Bt, Cr)
    s = jnp.dot(h, w2_ref[...], preferred_element_type=jnp.float32) + b2_ref[...]
    s = jnp.clip(s + 3.0, 0.0, 6.0) * (1.0 / 6.0)                      # (Bt, C)
    s = s.astype(x.dtype)                     # cast the gate, not the x tile

    # ----- scale (native dtype, broadcast over HW lanes, no transpose) -----
    o_ref[...] = x * s[:, :, None]


def _pick_batch_tile(B, per_batch_block_bytes, vmem_budget_bytes):
    # Double-buffered input + output blocks -> 4 block copies live at once.
    cap = max(1, vmem_budget_bytes // (4 * per_batch_block_bytes))
    bt = min(B, cap)
    if B >= 2:
        bt = min(bt, max(1, B // 2))     # keep >=2 grid steps (v7x has 2 TCs)
    while bt > 1 and B % bt != 0:        # prefer a divisor of B (no padding)
        bt -= 1
    return max(bt, 1)


def se_layer(x, w1, b1, w2, b2, *, vmem_budget_bytes=16 * 1024 * 1024):
    """x: (B, C, H, W). nn.Linear weights: w1 (Cr, C), b1 (Cr,), w2 (C, Cr), b2 (C,)."""
    B, C, H, W = x.shape
    Cr = w1.shape[0]
    HW = H * W
    dtype_bytes = jnp.dtype(x.dtype).itemsize

    x_flat = x.reshape(B, C, HW)

    bt = _pick_batch_tile(B, C * HW * dtype_bytes, vmem_budget_bytes)
    grid = (B // bt,)

    # Gate math runs in (Bt, C) orientation -> pre-transpose Linear weights.
    w1_t = jnp.asarray(w1.T, dtype=jnp.float32)       # (C, Cr)
    w2_t = jnp.asarray(w2.T, dtype=jnp.float32)       # (Cr, C)
    b1_2d = jnp.asarray(b1, dtype=jnp.float32).reshape(1, Cr)
    b2_2d = jnp.asarray(b2, dtype=jnp.float32).reshape(1, C)

    block_bytes = bt * C * HW * dtype_bytes
    weight_bytes = (C * Cr * 2 + Cr + C) * 4
    needed = 4 * block_bytes + 2 * weight_bytes       # double-buffered in+out
    vmem_limit = int(min(max(needed + (4 << 20), 32 << 20), 56 << 20))

    total_bytes = 2 * B * C * HW * dtype_bytes + 2 * (C * Cr * 4)
    cost = pl.CostEstimate(
        flops=2 * B * C * Cr * 2 + 2 * B * C * HW,
        transcendentals=0,
        bytes_accessed=total_bytes,
    )

    out_flat = pl.pallas_call(
        _se_kernel,
        out_shape=jax.ShapeDtypeStruct((B, C, HW), x.dtype),
        grid_spec=pltpu.PrefetchScalarGridSpec(
            num_scalar_prefetch=0,
            grid=grid,
            in_specs=[
                pl.BlockSpec((bt, C, HW), lambda b: (b, 0, 0)),
                pl.BlockSpec((C, Cr), lambda b: (0, 0)),
                pl.BlockSpec((1, Cr), lambda b: (0, 0)),
                pl.BlockSpec((Cr, C), lambda b: (0, 0)),
                pl.BlockSpec((1, C), lambda b: (0, 0)),
            ],
            out_specs=pl.BlockSpec((bt, C, HW), lambda b: (b, 0, 0)),
        ),
        compiler_params=pltpu.CompilerParams(
            dimension_semantics=("parallel",),
            vmem_limit_bytes=vmem_limit,
        ),
        cost_estimate=cost,
    )(x_flat, w1_t, b1_2d, w2_t, b2_2d)

    return out_flat.reshape(B, C, H, W)


def _reference(x, w1, b1, w2, b2):
    # Plain-JAX reference of the PyTorch forward (for correctness check).
    y = jnp.mean(x, axis=(2, 3))                              # (B, C)
    h = jnp.maximum(y @ w1.T + b1, 0.0)                       # (B, Cr)
    s = h @ w2.T + b2                                         # (B, C)
    s = jnp.clip(s + 3.0, 0.0, 6.0) / 6.0                     # relu6(.+3)/6
    return x * s[:, :, None, None]


if __name__ == "__main__":
    # Small shapes consistent with the module: batch=2, channels=8, spatial=16,
    # reduction=4 -> hidden = channels // 4 = 2.
    B, C, H, W = 2, 8, 16, 16
    reduction = 4
    Cr = C // reduction

    key = jax.random.PRNGKey(0)
    kx, kw1, kb1, kw2, kb2 = jax.random.split(key, 5)

    x = jax.random.normal(kx, (B, C, H, W), dtype=jnp.float32)
    # nn.Linear weight shapes: (out_features, in_features).
    w1 = jax.random.normal(kw1, (Cr, C), dtype=jnp.float32) * 0.1
    b1 = jax.random.normal(kb1, (Cr,), dtype=jnp.float32) * 0.1
    w2 = jax.random.normal(kw2, (C, Cr), dtype=jnp.float32) * 0.1
    b2 = jax.random.normal(kb2, (C,), dtype=jnp.float32) * 0.1

    out = se_layer(x, w1, b1, w2, b2)
    out = jax.block_until_ready(out)

    ref = _reference(x, w1, b1, w2, b2)
    assert out.shape == (B, C, H, W)
    assert jnp.allclose(out, ref, atol=1e-5, rtol=1e-5), "mismatch vs reference"

    print("KERNEL_OK")
</pallas_src>

<mosaic_0001>
module attributes {stable_mosaic.version = 11 : i64} {
  func.func @_se_kernel(%arg0: i32, %arg1: memref<1x8x256xf32, #tpu.memory_space<vmem>>, %arg2: memref<8x2xf32, #tpu.memory_space<vmem>>, %arg3: memref<1x2xf32, #tpu.memory_space<vmem>>, %arg4: memref<2x8xf32, #tpu.memory_space<vmem>>, %arg5: memref<1x8xf32, #tpu.memory_space<vmem>>, %arg6: memref<1x8x256xf32, #tpu.memory_space<vmem>>) attributes {dimension_semantics = [#tpu.dimension_semantics<parallel>], iteration_bounds = array<i64: 2>, scalar_prefetch = 0 : i64, scratch_operands = 0 : i64, tpu.core_type = #tpu.core_type<tc>, window_params = [{transform_indices = @transform_0, window_bounds = array<i64: 1, 8, 256>}, {pipeline_mode = #tpu.pipeline_mode<synchronous>, transform_indices = @transform_1, window_bounds = array<i64: 8, 2>}, {pipeline_mode = #tpu.pipeline_mode<synchronous>, transform_indices = @transform_2, window_bounds = array<i64: 1, 2>}, {pipeline_mode = #tpu.pipeline_mode<synchronous>, transform_indices = @transform_3, window_bounds = array<i64: 2, 8>}, {pipeline_mode = #tpu.pipeline_mode<synchronous>, transform_indices = @transform_4, window_bounds = array<i64: 1, 8>}, {transform_indices = @transform_5, window_bounds = array<i64: 1, 8, 256>}]} {
    %c0 = arith.constant 0 : index
    %c0_0 = arith.constant 0 : index
    %c0_1 = arith.constant 0 : index
    %0 = vector.load %arg1[%c0, %c0_0, %c0_1] : memref<1x8x256xf32, #tpu.memory_space<vmem>>, vector<1x8x256xf32>
    %cst = arith.constant dense<0.000000e+00> : vector<1x8xf32>
    %1 = vector.multi_reduction <add>, %0, %cst [2] : vector<1x8x256xf32> to vector<1x8xf32>
    %cst_2 = arith.constant 3.906250e-03 : f32
    %2 = vector.broadcast %cst_2 : f32 to vector<1x8xf32>
    %3 = arith.mulf %1, %2 : vector<1x8xf32>
    %c0_3 = arith.constant 0 : index
    %c0_4 = arith.constant 0 : index
    %4 = vector.load %arg2[%c0_3, %c0_4] : memref<8x2xf32, #tpu.memory_space<vmem>>, vector<8x2xf32>
    %cst_5 = arith.constant dense<0.000000e+00> : vector<1x2xf32>
    %5 = tpu.matmul %3, %4, %cst_5 {dimension_numbers = #tpu.dot_dimension_numbers<[1], [0], [0], [1], [0, 0, 1, 1], [], []>} : vector<1x8xf32>, vector<8x2xf32>, vector<1x2xf32> -> vector<1x2xf32>
    %c0_6 = arith.constant 0 : index
    %c0_7 = arith.constant 0 : index
    %6 = vector.load %arg3[%c0_6, %c0_7] : memref<1x2xf32, #tpu.memory_space<vmem>>, vector<1x2xf32>
    %7 = arith.addf %5, %6 : vector<1x2xf32>
    %cst_8 = arith.constant 0.000000e+00 : f32
    %8 = vector.broadcast %cst_8 : f32 to vector<1x2xf32>
    %9 = arith.maximumf %7, %8 : vector<1x2xf32>
    %c0_9 = arith.constant 0 : index
    %c0_10 = arith.constant 0 : index
    %10 = vector.load %arg4[%c0_9, %c0_10] : memref<2x8xf32, #tpu.memory_space<vmem>>, vector<2x8xf32>
    %cst_11 = arith.constant dense<0.000000e+00> : vector<1x8xf32>
    %11 = tpu.matmul %9, %10, %cst_11 {dimension_numbers = #tpu.dot_dimension_numbers<[1], [0], [0], [1], [0, 0, 1, 1], [], []>} : vector<1x2xf32>, vector<2x8xf32>, vector<1x8xf32> -> vector<1x8xf32>
    %c0_12 = arith.constant 0 : index
    %c0_13 = arith.constant 0 : index
    %12 = vector.load %arg5[%c0_12, %c0_13] : memref<1x8xf32, #tpu.memory_space<vmem>>, vector<1x8xf32>
    %13 = arith.addf %11, %12 : vector<1x8xf32>
    %cst_14 = arith.constant 3.000000e+00 : f32
    %14 = vector.broadcast %cst_14 : f32 to vector<1x8xf32>
    %15 = arith.addf %13, %14 : vector<1x8xf32>
    %cst_15 = arith.constant 0.000000e+00 : f32
    %cst_16 = arith.constant 6.000000e+00 : f32
    %16 = vector.broadcast %cst_15 : f32 to vector<1x8xf32>
    %17 = arith.maximumf %16, %15 : vector<1x8xf32>
    %18 = vector.broadcast %cst_16 : f32 to vector<1x8xf32>
    %19 = arith.minimumf %18, %17 : vector<1x8xf32>
    %cst_17 = arith.constant 0.166666672 : f32
    %20 = vector.broadcast %cst_17 : f32 to vector<1x8xf32>
    %21 = arith.mulf %19, %20 : vector<1x8xf32>
    %22 = vector.shape_cast %21 : vector<1x8xf32> to vector<1x8x1xf32>
    %23 = vector.broadcast %22 : vector<1x8x1xf32> to vector<1x8x256xf32>
    %24 = arith.mulf %0, %23 : vector<1x8x256xf32>
    %c0_18 = arith.constant 0 : index
    %c0_19 = arith.constant 0 : index
    %c0_20 = arith.constant 0 : index
    %25 = vector.load %arg6[%c0_18, %c0_19, %c0_20] : memref<1x8x256xf32, #tpu.memory_space<vmem>>, vector<1x8x256xf32>
    tpu.vector_store %arg6[%c0_18, %c0_19, %c0_20], %24 {strides = array<i32>} : memref<1x8x256xf32, #tpu.memory_space<vmem>>, vector<1x8x256xf32>,
    return
  }
  func.func @transform_0(%arg0: i32) -> (i32, i32, i32) {
    %c0_i32 = arith.constant 0 : i32
    %c0_i32_0 = arith.constant 0 : i32
    %c0_i32_1 = arith.constant 0 : i32
    return %arg0, %c0_i32, %c0_i32_0 : i32, i32, i32
  }
  func.func @transform_1(%arg0: i32) -> (i32, i32) {
    %c0_i32 = arith.constant 0 : i32
    %c0_i32_0 = arith.constant 0 : i32
    %c0_i32_1 = arith.constant 0 : i32
    return %c0_i32, %c0_i32_0 : i32, i32
  }
  func.func @transform_2(%arg0: i32) -> (i32, i32) {
    %c0_i32 = arith.constant 0 : i32
    %c0_i32_0 = arith.constant 0 : i32
    %c0_i32_1 = arith.constant 0 : i32
    return %c0_i32, %c0_i32_0 : i32, i32
  }
  func.func @transform_3(%arg0: i32) -> (i32, i32) {
    %c0_i32 = arith.constant 0 : i32
    %c0_i32_0 = arith.constant 0 : i32
    %c0_i32_1 = arith.constant 0 : i32
    return %c0_i32, %c0_i32_0 : i32, i32
  }
  func.func @transform_4(%arg0: i32) -> (i32, i32) {
    %c0_i32 = arith.constant 0 : i32
    %c0_i32_0 = arith.constant 0 : i32
    %c0_i32_1 = arith.constant 0 : i32
    return %c0_i32, %c0_i32_0 : i32, i32
  }
  func.func @transform_5(%arg0: i32) -> (i32, i32, i32) {
    %c0_i32 = arith.constant 0 : i32
    %c0_i32_0 = arith.constant 0 : i32
    %c0_i32_1 = arith.constant 0 : i32
    return %arg0, %c0_i32, %c0_i32_0 : i32, i32, i32
  }
}

</mosaic_0001>

<bundles_post_ra>
// kernel: tpu_custom_call.1
= control target key start
LH: loop header
LB: loop body
LE: loop exit
PB: predicated region body
PF: predicated region fallthrough
CT: control target
= control target key end

     0   :  { %10 = vsyncpa [#allocation3], 0  ;;  %s748_s0 = inlined_call_operand.hbm [shape: f32[2,8,256], index: 0, kind: input, shape index: {}]   ;;  %s749_s1 = inlined_call_operand.vmem [shape: f32[8,2], index: 1, kind: input, shape index: {}]   ;;  %s750_s2 = inlined_call_operand.vmem [shape: f32[1,2], index: 2, kind: input, shape index: {}]   ;;  %s751_s3 = inlined_call_operand.vmem [shape: f32[2,8], index: 3, kind: input, shape index: {}]   ;;  %s752_s4 = inlined_call_operand.vmem [shape: f32[1,8], index: 4, kind: input, shape index: {}]   ;;  %s753_s5 = inlined_call_operand.hbm [shape: f32[2,8,256], index: 5, kind: output, shape index: {}]  }
   0x1   :  { %12 = vsyncpa [#allocation3 + $0x1], 0 }
   0x2   :  { %13 = vsyncpa [#allocation4], 0 }
   0x3   :  { %15 = vsyncpa [#allocation4 + $0x1], 0  ;;  %s605_s18 = smov 0   ;;  %s607_s19 = smov 0  }
   0x4   :  { %s609_s20 = smov 0   ;;  %s611_s21 = smov 0  }
   0x5 LB: > { %s626_s22 = sadd.s32 4294967295, %s573_s21   ;;  %s411_s23 = sadd.s32 4294967294, %s573_s21   ;;  %s573_s21 = sphi %s611_s21, %s763_s21   ;;  %s569_s20 = sphi %s609_s20, %s762_s20   ;;  %s565_s19 = sphi %s607_s19, %s761_s19   ;;  %s561_s18 = sphi %s605_s18, %s760_s18  }
   0x6   : > { %s630_s24 = sadd.s32 1, %s573_s21   ;;  %s28_s25 = sadd.s32 1, %s569_s20 }
   0x7   : > { %s25_s26 = ssub.s32 %s573_s21, %s630_s24  ;;  %p35_p0 = scmp.ne.s32.totalorder %s569_s20, %s565_s19 }
   0x8   : > { %p26_p1 = scmp.eq.s32.totalorder %s25_s26, 0  ;;  %p36_p2 = scmp.eq.s32.totalorder %s573_s21, 0 }
   0x9   : > { %p41_p3 = scmp.ne.s32.totalorder %s565_s19, %s561_s18  ;;  %p42_p4 = scmp.eq.s32.totalorder %s626_s22, 0 }
   0xa   : > { %s642_s27 = scalar_select %p26_p1, %s569_s20, %s28_s25  }
   0xb   : > { %p644_p5 = por %p36_p2, %p35_p0  ;;  %p648_p6 = por %p42_p4, %p41_p3 }
   0xc   : > { %p149_p7 = scmp.eq.s32.totalorder %s626_s22, 1  ;;  %p155_p8 = scmp.eq.s32.totalorder %s411_s23, 1 }
   0xd   : > { %p442_p10 = scmp.lt.s32.totalorder %s573_s21, 2  ;;  %s187_s7 = sand.u32 1, %s569_s20  }
   0xe   : > { %p655_p11 = por %p149_p7, %p35_p0  ;;  %p659_p12 = por %p155_p8, %p41_p3 }
   0xf   : > { %s428_s8 = sshll.u32 %s573_s21, 4  ;;  %s414_s9 = sshll.u32 %s187_s7, 4 }
  0x10   : > { %s196_s12 = scalar_lea.hbm %s748_s0, %s428_s8  ;;  %s191_s14 = scalar_lea.vmem [#allocation2], %s414_s9 }
  0x11   : > { %s198_s13 = sshll.u32 %s196_s12, 4  ;;  %s200_s15 = sshll.u32 %s191_s14, 4  ;;  %s199_s13 = int_to_ptr.hbm [resolvable:$true] %s198_s13  ;;  %s201_s15 = int_to_ptr.vmem [resolvable:$true] %s200_s15 }
  0x12   : > { %p670_p13 = pnand %p442_p10, %p644_p5  ;;  %p417_p0 = scmp.ge.s32.totalorder %s573_s21, 1 }
  0x13   : > { %p205_p1 = scmp.lt.s32.totalorder %s573_s21, 3  ;;  %s188_s17 = scalar_lea.sflag [#allocation3], %s187_s7 }
  0x14   : > { %s477_s23 = sshra.s32 %s199_s13, 4  ;;  %p481_p3 = pneg %p670_p13  ;;  %s478_s23 = int_to_ptr.hbm [resolvable:$true] %s477_s23 }
  0x15   : > { %s479_s25 = scalar_lea.hbm %s478_s23, 16  ;;  %s484_s28 = scalar_lea.hbm %s748_s0, 32 }
  0x16   : > { %p480_p2 = scmp.ne.s32.totalorder %s478_s23, %s479_s25  ;;  %p485_p5 = scmp.lt.s32.totalorder %s478_s23, %s748_s0 }
  0x17   : > { %p486_p8 = scmp.lt.s32.totalorder %s484_s28, %s479_s25 }
  0x18   : > { %p482_p4 = pnand %p481_p3, %p480_p2 }
  0x19   : > { %p487_p10 = por %p486_p8, %p485_p5 }
  0x1a   : > { %p483_p7 = pneg %p482_p4 }
  0x1c   : > { %p488_p9 = pnand %p487_p10, %p483_p7 }
  0x1e   : > { %491 = shalt.err (!%p488_p9)
}
  0x1f   : > { %437 = dma.hbm_to_vmem [thread:$0]  (!%p670_p13), %s199_s13, 256, %s201_s15, %s188_s17  }
  0x20   : > { %p206_p2 = pnand %p417_p0, %p205_p1 }
  0x21   : > { %s691_s7 = sand.u32 (!%p206_p2), 1, %s565_s19  }
  0x22   : > { %209 = sbr.rel (%p206_p2) target bundleno = 552 (0x228), region = 40  ;;  %s418_s11 = sshll.u32 (!%p206_p2), %s691_s7, 4 }
  0x23   : > { %s212_s12 = scalar_lea.sflag (!%p206_p2), [#allocation3], %s691_s7  ;;  %s215_s14 = scalar_lea.vmem (!%p206_p2), [#allocation2], %s418_s11 }
  0x27   : > { %552 = dma.done.wait (%p648_p6), %s212_s12, 256  }
  0x28   : > { %554 = vsyncadd (%p648_p6), %s212_s12, 4294967040  ;;  %v243_v0 = vld [vmem:[%s215_s14] sm:$0xff]  ;;  %v244_v1 = vld [vmem:[%s215_s14 + $0x8] sm:$0xff]  ;;  %v252_v4 = vlaneseq  ;;  %vm255_vm0 = vcmask 64512   ;;  %vm285_vm1 = vcmask 1041408   ;;  %vm281_vm2 = vcmask 15360  }
  0x29   : > { %v245_v2 = vadd.f32 %v244_v1, %v243_v0  ;;  %v249_v3 = vld [vmem:[%s749_s1] sm:$0xff]  ;;  %s429_s8 = sshll.u32 %s626_s22, 4  ;;  %s242_s12 = scalar_lea.vmem [#allocation5], %s418_s11 }
  0x2a   : > { %273 = vmatpush.msra.mxu0 %v249_v3  ;;  %v253_v5 = vand.u32 127, %v252_v4  ;;  %v279_v9 = vld [vmem:[%s751_s3] sm:$0x3]  ;;  %v315_v14 = vshrl.u32 %v252_v4, 7  ;;  %s336_s10 = scalar_lea.hbm %s753_s5, %s429_s8  ;;  %s338_s14 = sshll.u32 %s242_s12, 4  ;;  %s339_s14 = int_to_ptr.vmem [resolvable:$true] %s338_s14 }
  0x2b   : > { %246 = vadd.xlane.f32.xlu0 %v245_v2  ;;  %421 = vmatpush.msk.msra.mxu1 %vm285_vm1, %v279_v9  ;;  %v250_v10 = vld [vmem:[%s750_s2] sm:$0x1]  ;;  %s340_s13 = sshll.u32 %s336_s10, 4  ;;  %s325_s15 = scalar_lea.sflag [#allocation4], %s691_s7  ;;  %s341_s13 = int_to_ptr.hbm [resolvable:$true] %s340_s13 }
  0x2c   : > { %476 = vset.pattern.permute.xlu0 %v315_v14  ;;  %v280_v15 = vld [vmem:[%s752_s4] sm:$0x1]  ;;  %s521_s16 = sshra.s32 %s341_s13, 4  ;;  %s527_s11 = scalar_lea.hbm %s753_s5, 32  ;;  %s522_s16 = int_to_ptr.hbm [resolvable:$true] %s521_s16 }
  0x2d   : > { %s523_s22 = scalar_lea.hbm %s522_s16, 16  ;;  %p528_p0 = scmp.lt.s32.totalorder %s522_s16, %s753_s5 }
  0x2e   : > { %p524_p6 = scmp.ne.s32.totalorder %s522_s16, %s523_s22  ;;  %p529_p1 = scmp.lt.s32.totalorder %s527_s11, %s523_s22 }
  0x30   : > { %p525_p9 = pnand %p524_p6, %p655_p11  ;;  %p530_p3 = por %p529_p1, %p528_p0 }
  0x32   : > { %p526_p13 = pneg %p525_p9 }
  0x34   : > { %p531_p4 = pnand %p530_p3, %p526_p13 }
  0x9e   : > { %v247_v6 = vpop.xlane.xlu0 %246 }
  0x9f   : > { %v248_v7 = vmul.f32 0.00390625, %v247_v6 }
  0xa1   : > { %v254_v8 = vperm.slane %v248_v7, %v253_v5 }
  0xa3   : > { %420 = vmatmul.msk.f32.vlgmr.msra.gmra.mxu0 %vm255_vm0, %v254_v8 }
 0x120   : > { %v275_v11 = vpop.f32.mrf.mxu0 }
 0x121   : > { %v276_v12 = vadd.f32 %v275_v11, %v250_v10 }
 0x123   : > { %v278_v13 = vmax.f32 %v276_v12, 0.0 }
 0x125   : > { %422 = vmatmul.msk.f32.vlgmr.msra.gmra.mxu1 %vm281_vm2, %v278_v13 }
 0x1a2   : > { %v306_v16 = vpop.f32.mrf.mxu1 }
 0x1a3   : > { %v307_v17 = vadd.f32 %v306_v16, %v280_v15 }
 0x1a5   : > { %v309_v18 = vadd.f32 3.0, %v307_v17 }
 0x1a7   : > { %v310_v19 = vmax.f32 %v309_v18, 0.0 }
 0x1a9   : > { %v311_v20 = vmin.f32 %v310_v19, 6.0 }
 0x1ab   : > { %v312_v21 = vmul.f32 0.16666667, %v311_v20 }
 0x1ad   : > { %v313_v22 = vperm.slane %v312_v21, 0 }
 0x1af   : > { %318 = vperm.xlu0 %476, %v313_v22  }
 0x221   : > { %v319_v23 = vpop.permute.xlu0 %318 }
 0x222   : > { %v320_v24 = vmul.f32 %v319_v23, %v243_v0  ;;  %v321_v25 = vmul.f32 %v319_v23, %v244_v1 }
 0x224   : > { %322 = vst [vmem:[%s242_s12] sm:$0xff] %v320_v24 }
 0x225   : > { %323 = vst [vmem:[%s242_s12 + $0x8] sm:$0xff] %v321_v25 }
 0x226   : > { %534 = shalt.err (!%p531_p4)
}
 0x227   : > { %432 = dma.vmem_to_hbm [thread:$0]  (%p655_p11), %s339_s14, 256, %s341_s13, %s325_s15  }
 0x228 PF: > { %s352_s7 = sand.u32 1, %s561_s18   ;;  %p759_p7 = scmp.ge.s32.totalorder %s573_s21, 2 }
 0x229   : > { %s353_s26 = scalar_lea.sflag [#allocation4], %s352_s7 }
 0x22a   : > { %p439_p5 = pnand %p759_p7, %p659_p12 }
 0x22c   : > { %p440_p8 = pneg %p439_p5 }
 0x22e   : > { %556 = dma.done.wait (%p440_p8), %s353_s26, 256  }
 0x22f   : > { %558 = vsyncadd (%p440_p8), %s353_s26, 4294967040  ;;  %p18_p10 = scmp.ge.s32.totalorder %s630_s24, 4   ;;  %s760_s18 = smov %s565_s19 }
 0x230   : > { %s761_s19 = smov %s569_s20  ;;  %s762_s20 = smov %s642_s27 }
 0x231   : > { %s763_s21 = smov %s630_s24  ;;  %20 = sbr.rel (!%p18_p10) target bundleno = 5 (0x5), region = 85 }
 0x236   :  { %359 = vsyncpa [#allocation3], 1 }
 0x237   :  { %361 = vsyncpa [#allocation3 + $0x1], 1 }
 0x238   :  { %362 = vsyncpa [#allocation4], 1 }
 0x239   :  { %364 = vsyncpa [#allocation4 + $0x1], 1 }

</bundles_post_ra>
